<compile_context>
chip_gen: v6e
topology: v6e:2x2x1
jax: 0.10.0
libtpu: 0.0.40
codegen_flags: <defaults>
</compile_context>

<pallas_src>
import jax
import jax.numpy as jnp
from jax.experimental import pallas as pl
from jax.experimental.pallas import tpu as pltpu

# Module hyperparameters (from IrisKAN.py)
INPUT_DIM = 4      # iris features
K = 3              # classes
H = 16             # output_size (hidden width of every inner/outer net)
OUT_PAD = 128      # lane-dense padded output width (wrapper slices back to K)

KD = K * INPUT_DIM
KDH = KD * H
KH = K * H


def _round_up(n, m):
    return ((n + m - 1) // m) * m


def kan_kernel(x_ref,
               w1e_ref, b1e_ref, w2e_ref, b2e_ref,
               o1e_ref, b3e_ref, o2e_ref, b4e_ref,
               out_ref):
    """One batch tile of the fused KAN forward.

    x_ref   : (TB, D)
    w1e_ref : (D, K*D*H)   feature-gated inner Linear(1,H) weights
    b1e_ref : (1, K*D*H)   inner Linear(1,H) biases (flattened)
    w2e_ref : (K*D*H, K)   class-gated inner Linear(H,1) reducer (folds the sum over i)
    b2e_ref : (1, K)       per-class sum of inner Linear(H,1) biases
    o1e_ref : (K, K*H)     block-diagonal outer Linear(1,H) weights
    b3e_ref : (1, K*H)     outer Linear(1,H) biases (flattened)
    o2e_ref : (K*H, 128)   block-diagonal outer Linear(H,1) weights, zero-padded to 128 lanes
    b4e_ref : (1, 128)     outer Linear(H,1) biases, zero-padded
    out_ref : (TB, 128)    columns [0, K) hold the result
    """
    x = x_ref[...]                                                            # (TB, D)

    # All K*D inner first layers at once (lane-dense 192-wide slab) — MXU.
    h1 = jnp.maximum(
        jnp.dot(x, w1e_ref[...], preferred_element_type=jnp.float32) + b1e_ref[...],
        0.0)                                                                  # (TB, 192)

    # Inner second layers + sum over features in one block-structured matmul — MXU.
    s = jnp.dot(h1, w2e_ref[...], preferred_element_type=jnp.float32) + b2e_ref[...]   # (TB, K)

    # Outer first layers for all K heads — MXU.
    h2 = jnp.maximum(
        jnp.dot(s, o1e_ref[...], preferred_element_type=jnp.float32) + b3e_ref[...],
        0.0)                                                                  # (TB, K*H)

    # Outer second layers, lane-padded output → single unmasked store — MXU.
    out_ref[...] = (jnp.dot(h2, o2e_ref[...], preferred_element_type=jnp.float32)
                    + b4e_ref[...])                                           # (TB, 128)


def pack_params(params):
    """Build the block-structured matrices the kernel consumes from PyTorch-shaped params."""
    iw1, ib1, iw2, ib2, ow1, ob1, ow2, ob2 = params
    f32 = jnp.float32

    # Inner first layer: W1e[i, r*H + h] = iw1[r, h] iff feature(r) == i  (r = k*D + i)
    feat_idx = jnp.arange(KD) % INPUT_DIM
    onehot_feat = jax.nn.one_hot(feat_idx, INPUT_DIM, dtype=f32)              # (KD, D)
    W1e = (onehot_feat.T[:, :, None] * iw1[None, :, :]).reshape(INPUT_DIM, KDH)
    b1e = ib1.reshape(1, KDH)

    # Inner second layer + feature sum: W2e[r*H + h, k] = iw2[r, h] iff class(r) == k
    cls_idx = jnp.arange(KD) // INPUT_DIM
    onehot_cls = jax.nn.one_hot(cls_idx, K, dtype=f32)                        # (KD, K)
    W2e = (iw2[:, :, None] * onehot_cls[:, None, :]).reshape(KDH, K)
    b2e = ib2.reshape(K, INPUT_DIM).sum(axis=1).reshape(1, K)                 # sum_i ib2[k*D+i]

    # Outer first layer: O1e[k, k'*H + h] = ow1[k', h] iff k == k'
    eyeK = jnp.eye(K, dtype=f32)
    O1e = (eyeK[:, :, None] * ow1[None, :, :]).reshape(K, KH)
    b3e = ob1.reshape(1, KH)

    # Outer second layer: O2e[k*H + h, k'] = ow2[k, h] iff k == k'  (zero-padded to 128 lanes)
    O2e = (ow2[:, :, None] * eyeK[:, None, :]).reshape(KH, K)
    O2e = jnp.pad(O2e, ((0, 0), (0, OUT_PAD - K)))
    b4e = jnp.pad(ob2.reshape(1, K), ((0, 0), (0, OUT_PAD - K)))

    return (W1e, b1e, W2e, b2e, O1e, b3e, O2e, b4e)


def kan_forward(x, params, *, tb=512):
    """x: (B, INPUT_DIM) float32 -> (B, K) float32."""
    B = x.shape[0]
    packed = pack_params(params)

    # Batch tile: at most `tb`, at least a sublane multiple; pad B to a tile multiple.
    TB = min(tb, _round_up(B, 8))
    B_pad = _round_up(B, TB)
    if B_pad != B:
        x = jnp.pad(x, ((0, B_pad - B), (0, 0)))

    grid = (pl.cdiv(B_pad, TB),)

    def const_spec(shape):
        # Weights stay resident across batch tiles (constant block index).
        return pl.BlockSpec(shape, lambda i: (0, 0))

    out = pl.pallas_call(
        kan_kernel,
        out_shape=jax.ShapeDtypeStruct((B_pad, OUT_PAD), jnp.float32),
        grid=grid,
        in_specs=[
            pl.BlockSpec((TB, INPUT_DIM), lambda i: (i, 0)),   # x: tiled over batch
            const_spec((INPUT_DIM, KDH)),                       # W1e
            const_spec((1, KDH)),                               # b1e
            const_spec((KDH, K)),                               # W2e
            const_spec((1, K)),                                 # b2e
            const_spec((K, KH)),                                # O1e
            const_spec((1, KH)),                                # b3e
            const_spec((KH, OUT_PAD)),                          # O2e
            const_spec((1, OUT_PAD)),                           # b4e
        ],
        out_specs=pl.BlockSpec((TB, OUT_PAD), lambda i: (i, 0)),
        compiler_params=pltpu.CompilerParams(
            dimension_semantics=("parallel",)),                 # megacore-shardable on v7x
    )(x, *packed)

    return out[:B, :K]


def kan_reference(x, params):
    """Pure-JAX reference with the original (un-fused) per-net semantics."""
    iw1, ib1, iw2, ib2, ow1, ob1, ow2, ob2 = params
    outs = []
    for k in range(K):
        s = jnp.zeros((x.shape[0], 1), jnp.float32)
        for i in range(INPUT_DIM):
            r = k * INPUT_DIM + i
            xi = x[:, i:i + 1]
            h = jax.nn.relu(xi * iw1[r][None, :] + ib1[r][None, :])
            yi = jnp.sum(h * iw2[r][None, :], axis=1, keepdims=True) + ib2[r][None, :]
            s = s + yi
        ho = jax.nn.relu(s * ow1[k][None, :] + ob1[k][None, :])
        zk = jnp.sum(ho * ow2[k][None, :], axis=1, keepdims=True) + ob2[k][None, :]
        outs.append(zk)
    return jnp.concatenate(outs, axis=1)


def init_params(key):
    """Deterministic synthetic parameters matching the PyTorch module's shapes."""
    ks = jax.random.split(key, 8)
    iw1 = jax.random.normal(ks[0], (KD, H), jnp.float32) * 0.5   # inner Linear(1,H).weight
    ib1 = jax.random.normal(ks[1], (KD, H), jnp.float32) * 0.1   # inner Linear(1,H).bias
    iw2 = jax.random.normal(ks[2], (KD, H), jnp.float32) * 0.5   # inner Linear(H,1).weight
    ib2 = jax.random.normal(ks[3], (KD, 1), jnp.float32) * 0.1   # inner Linear(H,1).bias
    ow1 = jax.random.normal(ks[4], (K, H), jnp.float32) * 0.5    # outer Linear(1,H).weight
    ob1 = jax.random.normal(ks[5], (K, H), jnp.float32) * 0.1    # outer Linear(1,H).bias
    ow2 = jax.random.normal(ks[6], (K, H), jnp.float32) * 0.5    # outer Linear(H,1).weight
    ob2 = jax.random.normal(ks[7], (K, 1), jnp.float32) * 0.1    # outer Linear(H,1).bias
    return (iw1, ib1, iw2, ib2, ow1, ob1, ow2, ob2)


if __name__ == "__main__":
    key = jax.random.PRNGKey(0)
    k_x, k_x2, k_p = jax.random.split(key, 3)
    params = init_params(k_p)

    # Small, module-consistent shape: (batch=8, features=4).
    B = 8
    x = jax.random.normal(k_x, (B, INPUT_DIM), jnp.float32)
    out = jax.block_until_ready(kan_forward(x, params))
    ref = kan_reference(x, params)
    assert out.shape == (B, K), out.shape
    assert jnp.allclose(out, ref, atol=1e-4, rtol=1e-4), (out, ref)

    # Exercise the batch grid + tail padding path (multiple tiles, B not divisible by TB).
    B2 = 200
    x2 = jax.random.normal(k_x2, (B2, INPUT_DIM), jnp.float32)
    out2 = jax.block_until_ready(kan_forward(x2, params, tb=64))
    ref2 = kan_reference(x2, params)
    assert out2.shape == (B2, K), out2.shape
    assert jnp.allclose(out2, ref2, atol=1e-4, rtol=1e-4)

    print("KERNEL_OK")
</pallas_src>

<mosaic_0001>
module attributes {stable_mosaic.version = 11 : i64} {
  func.func @kan_kernel(%arg0: i32, %arg1: memref<8x4xf32, #tpu.memory_space<vmem>>, %arg2: memref<4x192xf32, #tpu.memory_space<vmem>>, %arg3: memref<1x192xf32, #tpu.memory_space<vmem>>, %arg4: memref<192x3xf32, #tpu.memory_space<vmem>>, %arg5: memref<1x3xf32, #tpu.memory_space<vmem>>, %arg6: memref<3x48xf32, #tpu.memory_space<vmem>>, %arg7: memref<1x48xf32, #tpu.memory_space<vmem>>, %arg8: memref<48x128xf32, #tpu.memory_space<vmem>>, %arg9: memref<1x128xf32, #tpu.memory_space<vmem>>, %arg10: memref<8x128xf32, #tpu.memory_space<vmem>>) attributes {dimension_semantics = [#tpu.dimension_semantics<parallel>], iteration_bounds = array<i64: 1>, scalar_prefetch = 0 : i64, scratch_operands = 0 : i64, tpu.core_type = #tpu.core_type<tc>, window_params = [{transform_indices = @transform_0, window_bounds = array<i64: 8, 4>}, {pipeline_mode = #tpu.pipeline_mode<synchronous>, transform_indices = @transform_1, window_bounds = array<i64: 4, 192>}, {pipeline_mode = #tpu.pipeline_mode<synchronous>, transform_indices = @transform_2, window_bounds = array<i64: 1, 192>}, {pipeline_mode = #tpu.pipeline_mode<synchronous>, transform_indices = @transform_3, window_bounds = array<i64: 192, 3>}, {pipeline_mode = #tpu.pipeline_mode<synchronous>, transform_indices = @transform_4, window_bounds = array<i64: 1, 3>}, {pipeline_mode = #tpu.pipeline_mode<synchronous>, transform_indices = @transform_5, window_bounds = array<i64: 3, 48>}, {pipeline_mode = #tpu.pipeline_mode<synchronous>, transform_indices = @transform_6, window_bounds = array<i64: 1, 48>}, {pipeline_mode = #tpu.pipeline_mode<synchronous>, transform_indices = @transform_7, window_bounds = array<i64: 48, 128>}, {pipeline_mode = #tpu.pipeline_mode<synchronous>, transform_indices = @transform_8, window_bounds = array<i64: 1, 128>}, {transform_indices = @transform_9, window_bounds = array<i64: 8, 128>}]} {
    %c0 = arith.constant 0 : index
    %c0_0 = arith.constant 0 : index
    %0 = vector.load %arg1[%c0, %c0_0] : memref<8x4xf32, #tpu.memory_space<vmem>>, vector<8x4xf32>
    %c0_1 = arith.constant 0 : index
    %c0_2 = arith.constant 0 : index
    %1 = vector.load %arg2[%c0_1, %c0_2] : memref<4x192xf32, #tpu.memory_space<vmem>>, vector<4x192xf32>
    %cst = arith.constant dense<0.000000e+00> : vector<8x192xf32>
    %2 = tpu.matmul %0, %1, %cst {dimension_numbers = #tpu.dot_dimension_numbers<[1], [0], [0], [1], [0, 0, 1, 1], [], []>} : vector<8x4xf32>, vector<4x192xf32>, vector<8x192xf32> -> vector<8x192xf32>
    %c0_3 = arith.constant 0 : index
    %c0_4 = arith.constant 0 : index
    %3 = vector.load %arg3[%c0_3, %c0_4] : memref<1x192xf32, #tpu.memory_space<vmem>>, vector<1x192xf32>
    %4 = vector.broadcast %3 : vector<1x192xf32> to vector<8x192xf32>
    %5 = arith.addf %2, %4 : vector<8x192xf32>
    %cst_5 = arith.constant 0.000000e+00 : f32
    %6 = vector.broadcast %cst_5 : f32 to vector<8x192xf32>
    %7 = arith.maximumf %5, %6 : vector<8x192xf32>
    %c0_6 = arith.constant 0 : index
    %c0_7 = arith.constant 0 : index
    %8 = vector.load %arg4[%c0_6, %c0_7] : memref<192x3xf32, #tpu.memory_space<vmem>>, vector<192x3xf32>
    %cst_8 = arith.constant dense<0.000000e+00> : vector<8x3xf32>
    %9 = tpu.matmul %7, %8, %cst_8 {dimension_numbers = #tpu.dot_dimension_numbers<[1], [0], [0], [1], [0, 0, 1, 1], [], []>} : vector<8x192xf32>, vector<192x3xf32>, vector<8x3xf32> -> vector<8x3xf32>
    %c0_9 = arith.constant 0 : index
    %c0_10 = arith.constant 0 : index
    %10 = vector.load %arg5[%c0_9, %c0_10] : memref<1x3xf32, #tpu.memory_space<vmem>>, vector<1x3xf32>
    %11 = vector.broadcast %10 : vector<1x3xf32> to vector<8x3xf32>
    %12 = arith.addf %9, %11 : vector<8x3xf32>
    %c0_11 = arith.constant 0 : index
    %c0_12 = arith.constant 0 : index
    %13 = vector.load %arg6[%c0_11, %c0_12] : memref<3x48xf32, #tpu.memory_space<vmem>>, vector<3x48xf32>
    %cst_13 = arith.constant dense<0.000000e+00> : vector<8x48xf32>
    %14 = tpu.matmul %12, %13, %cst_13 {dimension_numbers = #tpu.dot_dimension_numbers<[1], [0], [0], [1], [0, 0, 1, 1], [], []>} : vector<8x3xf32>, vector<3x48xf32>, vector<8x48xf32> -> vector<8x48xf32>
    %c0_14 = arith.constant 0 : index
    %c0_15 = arith.constant 0 : index
    %15 = vector.load %arg7[%c0_14, %c0_15] : memref<1x48xf32, #tpu.memory_space<vmem>>, vector<1x48xf32>
    %16 = vector.broadcast %15 : vector<1x48xf32> to vector<8x48xf32>
    %17 = arith.addf %14, %16 : vector<8x48xf32>
    %cst_16 = arith.constant 0.000000e+00 : f32
    %18 = vector.broadcast %cst_16 : f32 to vector<8x48xf32>
    %19 = arith.maximumf %17, %18 : vector<8x48xf32>
    %c0_17 = arith.constant 0 : index
    %c0_18 = arith.constant 0 : index
    %20 = vector.load %arg8[%c0_17, %c0_18] : memref<48x128xf32, #tpu.memory_space<vmem>>, vector<48x128xf32>
    %cst_19 = arith.constant dense<0.000000e+00> : vector<8x128xf32>
    %21 = tpu.matmul %19, %20, %cst_19 {dimension_numbers = #tpu.dot_dimension_numbers<[1], [0], [0], [1], [0, 0, 1, 1], [], []>} : vector<8x48xf32>, vector<48x128xf32>, vector<8x128xf32> -> vector<8x128xf32>
    %c0_20 = arith.constant 0 : index
    %c0_21 = arith.constant 0 : index
    %22 = vector.load %arg9[%c0_20, %c0_21] : memref<1x128xf32, #tpu.memory_space<vmem>>, vector<1x128xf32>
    %23 = vector.broadcast %22 : vector<1x128xf32> to vector<8x128xf32>
    %24 = arith.addf %21, %23 : vector<8x128xf32>
    %c0_22 = arith.constant 0 : index
    %c0_23 = arith.constant 0 : index
    %25 = vector.load %arg10[%c0_22, %c0_23] : memref<8x128xf32, #tpu.memory_space<vmem>>, vector<8x128xf32>
    tpu.vector_store %arg10[%c0_22, %c0_23], %24 {strides = array<i32>} : memref<8x128xf32, #tpu.memory_space<vmem>>, vector<8x128xf32>,
    return
  }
  func.func @transform_0(%arg0: i32) -> (i32, i32) {
    %c0_i32 = arith.constant 0 : i32
    %c0_i32_0 = arith.constant 0 : i32
    return %arg0, %c0_i32 : i32, i32
  }
  func.func @transform_1(%arg0: i32) -> (i32, i32) {
    %c0_i32 = arith.constant 0 : i32
    %c0_i32_0 = arith.constant 0 : i32
    %c0_i32_1 = arith.constant 0 : i32
    return %c0_i32, %c0_i32_0 : i32, i32
  }
  func.func @transform_2(%arg0: i32) -> (i32, i32) {
    %c0_i32 = arith.constant 0 : i32
    %c0_i32_0 = arith.constant 0 : i32
    %c0_i32_1 = arith.constant 0 : i32
    return %c0_i32, %c0_i32_0 : i32, i32
  }
  func.func @transform_3(%arg0: i32) -> (i32, i32) {
    %c0_i32 = arith.constant 0 : i32
    %c0_i32_0 = arith.constant 0 : i32
    %c0_i32_1 = arith.constant 0 : i32
    return %c0_i32, %c0_i32_0 : i32, i32
  }
  func.func @transform_4(%arg0: i32) -> (i32, i32) {
    %c0_i32 = arith.constant 0 : i32
    %c0_i32_0 = arith.constant 0 : i32
    %c0_i32_1 = arith.constant 0 : i32
    return %c0_i32, %c0_i32_0 : i32, i32
  }
  func.func @transform_5(%arg0: i32) -> (i32, i32) {
    %c0_i32 = arith.constant 0 : i32
    %c0_i32_0 = arith.constant 0 : i32
    %c0_i32_1 = arith.constant 0 : i32
    return %c0_i32, %c0_i32_0 : i32, i32
  }
  func.func @transform_6(%arg0: i32) -> (i32, i32) {
    %c0_i32 = arith.constant 0 : i32
    %c0_i32_0 = arith.constant 0 : i32
    %c0_i32_1 = arith.constant 0 : i32
    return %c0_i32, %c0_i32_0 : i32, i32
  }
  func.func @transform_7(%arg0: i32) -> (i32, i32) {
    %c0_i32 = arith.constant 0 : i32
    %c0_i32_0 = arith.constant 0 : i32
    %c0_i32_1 = arith.constant 0 : i32
    return %c0_i32, %c0_i32_0 : i32, i32
  }
  func.func @transform_8(%arg0: i32) -> (i32, i32) {
    %c0_i32 = arith.constant 0 : i32
    %c0_i32_0 = arith.constant 0 : i32
    %c0_i32_1 = arith.constant 0 : i32
    return %c0_i32, %c0_i32_0 : i32, i32
  }
  func.func @transform_9(%arg0: i32) -> (i32, i32) {
    %c0_i32 = arith.constant 0 : i32
    %c0_i32_0 = arith.constant 0 : i32
    return %arg0, %c0_i32 : i32, i32
  }
}

</mosaic_0001>

<bundles_post_ra>
// kernel: tpu_custom_call.1
= control target key start
LH: loop header
LB: loop body
LE: loop exit
PB: predicated region body
PF: predicated region fallthrough
CT: control target
= control target key end

     0   :  { %vm53_vm0 = vcmask 1043456   ;;  %v490_v3 = vmov 0.0   ;;  %vm49_vm1 = vcmask 31744   ;;  %s691_s0 = inlined_call_operand.vmem [shape: f32[8,4], index: 0, kind: input, shape index: {}]   ;;  %s692_s1 = inlined_call_operand.vmem [shape: f32[4,192], index: 1, kind: input, shape index: {}]   ;;  %s693_s2 = inlined_call_operand.vmem [shape: f32[1,192], index: 2, kind: input, shape index: {}]   ;;  %s694_s3 = inlined_call_operand.vmem [shape: f32[192,3], index: 3, kind: input, shape index: {}]   ;;  %s695_s4 = inlined_call_operand.vmem [shape: f32[1,3], index: 4, kind: input, shape index: {}]   ;;  %s696_s5 = inlined_call_operand.vmem [shape: f32[3,48], index: 5, kind: input, shape index: {}]   ;;  %s697_s6 = inlined_call_operand.vmem [shape: f32[1,48], index: 6, kind: input, shape index: {}]   ;;  %s698_s7 = inlined_call_operand.vmem [shape: f32[48,128], index: 7, kind: input, shape index: {}]   ;;  %s699_s8 = inlined_call_operand.vmem [shape: f32[1,128], index: 8, kind: input, shape index: {}]   ;;  %s700_s9 = inlined_call_operand.hbm [shape: f32[8,128], index: 9, kind: output, shape index: {}]  }
   0x1   :  { %v34_v0 = vld [vmem:[%s692_s1] sm:$0xff]  ;;  %v146_v1 = vld [vmem:[%s694_s3 + $0x78] sm:$0xff]  ;;  %122 = vmatprep.mubr.f32.mxu0 %v490_v3  ;;  %166 = vmatprep.subr.mxu1 %v490_v3  ;;  %v145_v4 = vld [vmem:[%s694_s3 + $0x70] sm:$0xff] }
   0x2   :  { %v48_v2 = vcombine.high %v34_v0, %v34_v0  ;;  %v33_v5 = vld [vmem:[%s691_s0] sm:$0xff]  ;;  %167 = vmatpush1.msra.mxu1 %v146_v1  ;;  %v144_v6 = vld [vmem:[%s694_s3 + $0x68] sm:$0xff]  ;;  %v142_v8 = vld [vmem:[%s694_s3 + $0x58] sm:$0xff] }
   0x3   :  { %168 = vmatprep.subr.mxu1 %v490_v3  ;;  %v143_v7 = vld [vmem:[%s694_s3 + $0x60] sm:$0xff] }
   0x4   :  { %425 = vmatprep.subr.msk.mxu0 %vm53_vm0, %v48_v2  ;;  %169 = vmatpush1.msra.mxu1 %v145_v4 }
   0x5   :  { %426 = vmatpush1.msk.msra.mxu0 %vm53_vm0, %v34_v0  ;;  %170 = vmatprep.subr.mxu1 %v490_v3 }
   0x6   :  { %427 = vmatmul.mubr.msk.f32.vlgmr.msra.gmra.mxu0 %vm49_vm1, %v33_v5  ;;  %171 = vmatpush1.msra.mxu1 %v144_v6 }
   0x7   :  { %444 = vmatprep.subr.mxu0 %v490_v3  ;;  %172 = vmatprep.subr.mxu1 %v490_v3 }
   0x8   :  { %14 = vsyncpa [#allocation3], 0  ;;  %173 = vmatpush1.msra.mxu1 %v143_v7  ;;  %v141_v9 = vld [vmem:[%s694_s3 + $0x50] sm:$0xff]  ;;  %v140_v10 = vld [vmem:[%s694_s3 + $0x48] sm:$0xff]  ;;  %vm248_vm2 = vcmask 1042432   ;;  %v37_v29 = vlaneseq  ;;  %vm162_vm3 = vcmask 523264  }
   0x9   :  { %174 = vmatprep.subr.mxu1 %v490_v3  ;;  %v139_v11 = vld [vmem:[%s694_s3 + $0x40] sm:$0xff]  ;;  %v138_v12 = vld [vmem:[%s694_s3 + $0x38] sm:$0xff]  ;;  %v137_v13 = vld [vmem:[%s694_s3 + $0x30] sm:$0xff]  ;;  %vm491_vm4 = vmmov 0   ;;  %vm244_vm5 = vcmask 23552   ;;  %vm336_vm6 = vcmask 392192  }
   0xa   :  { %175 = vmatpush1.msra.mxu1 %v142_v8  ;;  %v136_v14 = vld [vmem:[%s694_s3 + $0x28] sm:$0xff]  ;;  %v135_v15 = vld [vmem:[%s694_s3 + $0x20] sm:$0xff]  ;;  %v134_v16 = vld [vmem:[%s694_s3 + $0x18] sm:$0xff]  ;;  %v38_v30 = vshrl.u32 %v37_v29, 7  ;;  %446 = vmatprep.mubr.msk.f32.mxu0 %vm491_vm4, %v490_v3  ;;  %s492_s10 = smov [#allocation2]  }
   0xb   :  { %176 = vmatprep.subr.mxu1 %v490_v3  ;;  %v133_v17 = vld [vmem:[%s694_s3 + $0x10] sm:$0xff]  ;;  %v132_v18 = vld [vmem:[%s694_s3 + $0x8] sm:$0xff]  ;;  %v131_v19 = vld [vmem:[%s694_s3] sm:$0xff]  ;;  %s417_s11 = sshll.u32 %s492_s10, 4  ;;  %s418_s11 = int_to_ptr.vmem [resolvable:$true] %s417_s11 }
   0xc   :  { %177 = vmatpush1.msra.mxu1 %v141_v9  ;;  %v154_v20 = vld [vmem:[%s694_s3 + $0xb8] sm:$0xff]  ;;  %v153_v21 = vld [vmem:[%s694_s3 + $0xb0] sm:$0xff]  ;;  %v152_v22 = vld [vmem:[%s694_s3 + $0xa8] sm:$0xff]  ;;  %v39_v31 = vsub.s32 0, %v38_v30  ;;  %v43_v33 = vsub.s32 1, %v38_v30  ;;  %p473_p1 = scmp.lt.s32.totalorder %s418_s11, %s418_s11 }
   0xd   :  { %178 = vmatprep.subr.mxu1 %v490_v3  ;;  %v151_v23 = vld [vmem:[%s694_s3 + $0xa0] sm:$0xff]  ;;  %v150_v24 = vld [vmem:[%s694_s3 + $0x98] sm:$0xff]  ;;  %v149_v25 = vld [vmem:[%s694_s3 + $0x90] sm:$0xff] }
   0xe   :  { %179 = vmatpush1.msra.mxu1 %v140_v10  ;;  %v148_v26 = vld [vmem:[%s694_s3 + $0x88] sm:$0xff]  ;;  %v147_v27 = vld [vmem:[%s694_s3 + $0x80] sm:$0xff]  ;;  %v326_v48 = vld [vmem:[%s698_s7 + $0x18] sm:$0xff] }
   0xf   :  { %180 = vmatprep.subr.mxu1 %v490_v3  ;;  %v236_v28 = vld [vmem:[%s696_s5] sm:$0x7]  ;;  %v328_v45 = vld [vmem:[%s698_s7 + $0x28] sm:$0xff]  ;;  %v325_v49 = vld [vmem:[%s698_s7 + $0x10] sm:$0xff] }
  0x10   :  { %181 = vmatpush1.msra.mxu1 %v139_v11  ;;  %445 = vmatpush3.msk.msra.mxu0 %vm248_vm2, %v236_v28  ;;  %v35_v32 = vld [vmem:[%s693_s2] sm:$0x3]  ;;  %v324_v50 = vld [vmem:[%s698_s7 + $0x8] sm:$0xff] }
  0x11   :  { %182 = vmatprep.subr.mxu1 %v490_v3  ;;  %449 = vmatprep.subr.mxu0 %v490_v3  ;;  %v40_v34 = vrot.slane %v35_v32, %v39_v31  ;;  %v44_v35 = vrot.slane %v35_v32, %v43_v33  ;;  %v428_v42 = vld [vmem:[%s695_s4] ss:$0 sm:$0xff] }
  0x12   :  { %183 = vmatpush1.msra.mxu1 %v138_v12  ;;  %v327_v47 = vld [vmem:[%s698_s7 + $0x20] sm:$0xff] }
  0x13   :  { %184 = vmatprep.subr.mxu1 %v490_v3  ;;  %v323_v51 = vld [vmem:[%s698_s7] sm:$0xff]  ;;  %s468_s7 = scalar_lea.vmem %s418_s11, 128 }
  0x14   :  { %185 = vmatpush1.msra.mxu1 %v137_v13  ;;  %v430_v52 = vld [vmem:[%s697_s6] ss:$0 sm:$0xff]  ;;  %p469_p0 = scmp.ne.s32.totalorder %s418_s11, %s468_s7  ;;  %p474_p2 = scmp.lt.s32.totalorder %s468_s7, %s468_s7 }
  0x15   :  { %186 = vmatprep.subr.mxu1 %v490_v3  ;;  %v433_v57 = vld [vmem:[%s699_s8] ss:$0 sm:$0xff] }
  0x16   :  { %187 = vmatpush1.msra.mxu1 %v136_v14  ;;  %p475_p3 = por %p474_p2, %p473_p1 }
  0x17   :  { %188 = vmatprep.subr.mxu1 %v490_v3 }
  0x18   :  { %189 = vmatpush1.msra.mxu1 %v135_v15  ;;  %p476_p4 = pnand %p475_p3, %p469_p0 }
  0x19   :  { %190 = vmatprep.subr.mxu1 %v490_v3 }
  0x1a   :  { %191 = vmatpush1.msra.mxu1 %v134_v16 }
  0x1b   :  { %192 = vmatprep.subr.mxu1 %v490_v3 }
  0x1c   :  { %193 = vmatpush1.msra.mxu1 %v133_v17 }
  0x1d   :  { %194 = vmatprep.subr.mxu1 %v490_v3 }
  0x1e   :  { %195 = vmatpush1.msra.mxu1 %v132_v18 }
  0x1f   :  { %196 = vmatprep.subr.mxu1 %v490_v3 }
  0x20   :  { %197 = vmatpush1.msra.mxu1 %v131_v19 }
  0x21   :  { %214 = vmatprep.subr.mxu1 %v490_v3 }
  0x22   :  { %215 = vmatpush2.msra.mxu1 %v154_v20 }
  0x23   :  { %216 = vmatprep.subr.mxu1 %v490_v3 }
  0x24   :  { %217 = vmatpush2.msra.mxu1 %v153_v21 }
  0x25   :  { %218 = vmatprep.subr.mxu1 %v490_v3 }
  0x26   :  { %219 = vmatpush2.msra.mxu1 %v152_v22 }
  0x27   :  { %220 = vmatprep.subr.mxu1 %v490_v3 }
  0x28   :  { %221 = vmatpush2.msra.mxu1 %v151_v23 }
  0x29   :  { %222 = vmatprep.subr.mxu1 %v490_v3 }
  0x2a   :  { %223 = vmatpush2.msra.mxu1 %v150_v24 }
  0x2b   :  { %224 = vmatprep.subr.mxu1 %v490_v3 }
  0x2c   :  { %225 = vmatpush2.msra.mxu1 %v149_v25 }
  0x2d   :  { %226 = vmatprep.subr.mxu1 %v490_v3 }
  0x2e   :  { %227 = vmatpush2.msra.mxu1 %v148_v26 }
  0x2f   :  { %228 = vmatprep.subr.mxu1 %v490_v3 }
  0x30   :  { %229 = vmatpush2.msra.mxu1 %v147_v27 }
  0xc6   :  { %v124_v36 = vpop.f32.mrf.mxu0 }
  0xc7   :  { %v125_v37 = vadd.f32 %v124_v36, %v40_v34 }
  0xc8   :  { %v126_v38 = vpop.f32.mrf.mxu0 }
  0xc9   :  { %v127_v39 = vadd.f32 %v126_v38, %v44_v35  ;;  %v129_v41 = vmax.f32 %v125_v37, 0.0 }
  0xcb   :  { %v130_v40 = vmax.f32 %v127_v39, 0.0 }
  0xcd   :  { %429 = vmatprep.mubr.msk.f32.mxu1 %vm162_vm3, %v130_v40 }
  0xce   :  { %231 = vmatmul.mubr.f32.vlgmr.msra.gmra.mxu1 %v129_v41 }
 0x18e   :  { %v232_v43 = vpop.f32.mrf.mxu1 }
 0x18f   :  { %v233_v44 = vadd.f32 %v428_v42, %v232_v43 }
 0x190   :  { %v234_v46 = vpop.f32.mrf.mxu1 }
 0x191   :  { %447 = vmatmul.mubr.msk.f32.vlgmr.msra.gmra.mxu0 %vm244_vm5, %v233_v44 }
 0x192   :  { %450 = vmatpush3.msra.mxu0 %v328_v45  ;;  %461 = vmatprep.mubr.msk.f32.mxu0 %vm491_vm4, %v490_v3 }
 0x193   :  { %451 = vmatprep.subr.mxu0 %v490_v3 }
 0x194   :  { %452 = vmatpush3.msra.mxu0 %v327_v47 }
 0x195   :  { %453 = vmatprep.subr.mxu0 %v490_v3 }
 0x196   :  { %454 = vmatpush3.msra.mxu0 %v326_v48 }
 0x197   :  { %455 = vmatprep.subr.mxu0 %v490_v3 }
 0x198   :  { %456 = vmatpush3.msra.mxu0 %v325_v49 }
 0x199   :  { %457 = vmatprep.subr.mxu0 %v490_v3 }
 0x19a   :  { %458 = vmatpush3.msra.mxu0 %v324_v50 }
 0x19b   :  { %459 = vmatprep.subr.mxu0 %v490_v3 }
 0x19c   :  { %460 = vmatpush3.msra.mxu0 %v323_v51 }
 0x251   :  { %v318_v53 = vpop.f32.mrf.mxu0 }
 0x252   :  { %v319_v54 = vadd.f32 %v430_v52, %v318_v53 }
 0x253   :  { %v448_v55 = vpop.f32.mrf.mxu0 }
 0x254   :  { %v322_v56 = vmax.f32 %v319_v54, 0.0 }
 0x256   :  { %462 = vmatmul.mubr.msk.f32.vlgmr.msra.gmra.mxu0 %vm336_vm6, %v322_v56 }
 0x316   :  { %v406_v58 = vpop.f32.mrf.mxu0 }
 0x317   :  { %v407_v59 = vadd.f32 %v433_v57, %v406_v58 }
 0x318   :  { %v463_v60 = vpop.f32.mrf.mxu0 }
 0x319   :  { %410 = vst [vmem:[#allocation2] sm:$0xff] %v407_v59 }
 0x31a   :  { %479 = shalt.err (!%p476_p4)
}
 0x31b   :  { %420 = dma.vmem_to_hbm [thread:$0]  %s418_s11, 128, %s700_s9, [#allocation3]  }
 0x31c   :  { %488 = dma.done.wait [#allocation3], 128  }
 0x31d   :  { %489 = vsyncadd [#allocation3], 4294967168 }
 0x31e   :  { %424 = vsyncpa [#allocation3], 1 }

</bundles_post_ra>
